<compile_context>
chip_gen: v5e
topology: v5e:2x2
jax: 0.10.0
libtpu: 0.0.40
codegen_flags: <defaults>
</compile_context>

<pallas_src>
import functools

import jax
import jax.numpy as jnp
from jax.experimental import pallas as pl
from jax.experimental.pallas import tpu as pltpu

NEG_SLOPE = 0.2   # PyG GATConv default negative_slope
LANE = 128        # pad channel dims to full lanes


def _choose_tile(n):
    """Largest row-tile that divides n (mult. of 32 for int8 sublane packing)."""
    for t in (512, 256, 128, 64, 32):
        if n % t == 0:
            return t
    return n  # small / odd graphs: single full block


def _round_up(v, m):
    return ((v + m - 1) // m) * m


# ---------------------------------------------------------------------------
# Stage 1: projection + attention-logit vectors
# ---------------------------------------------------------------------------
def gat_project_kernel(x_ref, w_ref, att_src_ref, att_dst_ref,
                       h_ref, asrc_ref, adst_ref):
    # h = x @ W on the MXU (bf16 operands, f32 accumulation).
    x = x_ref[...].astype(jnp.bfloat16)
    w = w_ref[...].astype(jnp.bfloat16)
    h = jnp.dot(x, w, preferred_element_type=jnp.float32)        # [N, Cp] f32
    h_ref[...] = h

    # a_dst[i] = sum_c h[i, c] * att_dst[c]  -> [N, 1]
    adst_ref[...] = jnp.sum(h * att_dst_ref[...], axis=-1, keepdims=True)

    # a_src as a [1, N] row: ones(1,Cp) . (h*att_src)(N,Cp), contracting Cp.
    # (N*Cp work instead of the old N*N*Cp broadcast matmul.)
    hw = h * att_src_ref[...]                                     # [N, Cp]
    ones_1c = jnp.ones((1, hw.shape[1]), jnp.float32)
    asrc_ref[...] = jax.lax.dot_general(
        ones_1c, hw,
        dimension_numbers=(((1,), (1,)), ((), ())),
        preferred_element_type=jnp.float32)                       # [1, N]


# ---------------------------------------------------------------------------
# Stage 2: masked softmax + neighbor aggregation, tiled over target rows
# ---------------------------------------------------------------------------
def gat_attention_kernel(adj_ref, adst_ref, asrc_ref, h_ref, bias_ref, out_ref,
                         *, apply_elu):
    adj = adj_ref[...]                      # [TILE_M, N] int8 (adj[i,j]: j -> i)
    a_dst = adst_ref[...]                   # [TILE_M, 1] f32
    a_src = asrc_ref[...]                   # [1, N] f32

    # e[i, j] = LeakyReLU(a_dst[i] + a_src[j], 0.2), masked to real edges.
    e = a_dst + a_src                       # [TILE_M, N]
    e = jnp.where(e > 0, e, NEG_SLOPE * e)
    e = jnp.where(adj > 0, e, jnp.float32(-1e30))

    # Row softmax over incoming edges (self-loops guarantee non-empty rows).
    m = jnp.max(e, axis=-1, keepdims=True)
    p = jnp.exp(e - m)
    denom = jnp.sum(p, axis=-1, keepdims=True)
    attn = p * pl.reciprocal(denom, approx=True)
    # TODO(synk): attention dropout (p=0.6) omitted -- eval-mode forward pass.

    # Weighted aggregation of neighbor features (bf16 MXU, f32 acc) + bias.
    out = jnp.dot(attn.astype(jnp.bfloat16), h_ref[...].astype(jnp.bfloat16),
                  preferred_element_type=jnp.float32) + bias_ref[...]

    if apply_elu:   # fused F.elu (alpha=1.0) after conv1
        out = jnp.where(out > 0, out, jnp.exp(out) - 1.0)

    out_ref[...] = out.astype(out_ref.dtype)


# ---------------------------------------------------------------------------
# One GATConv layer (channel-padded to LANE lanes)
# ---------------------------------------------------------------------------
def gat_conv(x, adj, w, att_src, att_dst, bias, *, apply_elu):
    n, f_in = x.shape
    cp = w.shape[1]

    # Stage 1: tiny — single block.
    h, a_src, a_dst = pl.pallas_call(
        gat_project_kernel,
        out_shape=(jax.ShapeDtypeStruct((n, cp), jnp.float32),
                   jax.ShapeDtypeStruct((1, n), jnp.float32),
                   jax.ShapeDtypeStruct((n, 1), jnp.float32)),
        grid=(1,),
        in_specs=[
            pl.BlockSpec((n, f_in), lambda i: (0, 0)),   # x
            pl.BlockSpec((f_in, cp), lambda i: (0, 0)),  # W
            pl.BlockSpec((1, cp), lambda i: (0, 0)),     # att_src
            pl.BlockSpec((1, cp), lambda i: (0, 0)),     # att_dst
        ],
        out_specs=(pl.BlockSpec((n, cp), lambda i: (0, 0)),
                   pl.BlockSpec((1, n), lambda i: (0, 0)),
                   pl.BlockSpec((n, 1), lambda i: (0, 0))),
        compiler_params=pltpu.CompilerParams(
            dimension_semantics=("arbitrary",)),
    )(x, w, att_src, att_dst)

    # Stage 2: tiled over target rows; adjacency streamed as int8.
    tile_m = _choose_tile(n)
    grid = (n // tile_m,)
    kernel = functools.partial(gat_attention_kernel, apply_elu=apply_elu)
    cost = pl.CostEstimate(
        flops=2 * n * n * cp + 6 * n * n,
        transcendentals=n * n,
        bytes_accessed=n * n + 2 * n * cp * 4 + 2 * n * 4)

    return pl.pallas_call(
        kernel,
        out_shape=jax.ShapeDtypeStruct((n, cp), jnp.float32),
        grid=grid,
        in_specs=[
            pl.BlockSpec((tile_m, n), lambda i: (i, 0)),   # adj tile (int8)
            pl.BlockSpec((tile_m, 1), lambda i: (i, 0)),   # a_dst tile
            pl.BlockSpec((1, n), lambda i: (0, 0)),        # a_src row (resident)
            pl.BlockSpec((n, cp), lambda i: (0, 0)),       # h (resident)
            pl.BlockSpec((1, cp), lambda i: (0, 0)),       # bias
        ],
        out_specs=pl.BlockSpec((tile_m, cp), lambda i: (i, 0)),
        compiler_params=pltpu.CompilerParams(
            dimension_semantics=("parallel",),
            vmem_limit_bytes=48 * 1024 * 1024),
        cost_estimate=cost,
    )(adj, a_dst, a_src, h, bias)


# ---------------------------------------------------------------------------
# Parameters (Glorot at logical shapes, then zero-padded to LANE channels)
# ---------------------------------------------------------------------------
def _pad_cols(a, cols):
    p = cols - a.shape[1]
    return jnp.pad(a, ((0, 0), (0, p))) if p > 0 else a


def _pad_rows(a, rows):
    p = rows - a.shape[0]
    return jnp.pad(a, ((0, p), (0, 0))) if p > 0 else a


def init_gat_encoder_params(key, in_channels, out_channels, hidden=32):
    ks = jax.random.split(key, 6)

    def glorot(k, shape):
        lim = jnp.sqrt(6.0 / (shape[0] + shape[1]))
        return jax.random.uniform(k, shape, jnp.float32, -lim, lim)

    cp = _round_up(hidden, LANE)        # padded hidden width (lane-dense)
    op = _round_up(out_channels, LANE)  # padded output width

    return {
        # conv1: GATConv(in_channels, 32, heads=1)
        "w1": _pad_cols(glorot(ks[0], (in_channels, hidden)), cp),
        "att_src1": _pad_cols(glorot(ks[1], (1, hidden)), cp),
        "att_dst1": _pad_cols(glorot(ks[2], (1, hidden)), cp),
        "b1": jnp.zeros((1, cp), jnp.float32),
        # conv2: GATConv(32, out_channels, heads=1, concat=True)
        "w2": _pad_rows(_pad_cols(glorot(ks[3], (hidden, out_channels)), op), cp),
        "att_src2": _pad_cols(glorot(ks[4], (1, out_channels)), op),
        "att_dst2": _pad_cols(glorot(ks[5], (1, out_channels)), op),
        "b2": jnp.zeros((1, op), jnp.float32),
    }


def gat_encoder_forward(params, x, edge_index, out_channels):
    n = x.shape[0]
    src, dst = edge_index[0], edge_index[1]
    # Dense int8 adjacency (glue): adj[target, source] = 1, plus self loops
    # (self loops keep every softmax row non-empty -> no NaN).
    adj = jnp.zeros((n, n), jnp.int8).at[dst, src].set(1)
    adj = jnp.maximum(adj, jnp.eye(n, dtype=jnp.int8))

    # conv1 -> ELU (fused)   (output channel-padded to LANE)
    h = gat_conv(x, adj, params["w1"], params["att_src1"], params["att_dst1"],
                 params["b1"], apply_elu=True)
    # conv2
    out = gat_conv(h, adj, params["w2"], params["att_src2"], params["att_dst2"],
                   params["b2"], apply_elu=False)
    return out[:, :out_channels]


if __name__ == "__main__":
    key = jax.random.PRNGKey(0)
    k_x, k_p = jax.random.split(key)

    N, IN_CH, OUT_CH = 16, 8, 8
    x = jax.random.normal(k_x, (N, IN_CH), jnp.float32)

    # Deterministic edge set: bidirectional ring graph -> edge_index [2, 32].
    idx = jnp.arange(N)
    src = jnp.concatenate([idx, (idx + 1) % N])
    dst = jnp.concatenate([(idx + 1) % N, idx])
    edge_index = jnp.stack([src, dst]).astype(jnp.int32)

    params = init_gat_encoder_params(k_p, IN_CH, OUT_CH)

    out = gat_encoder_forward(params, x, edge_index, OUT_CH)
    jax.block_until_ready(out)
    assert out.shape == (N, OUT_CH) and out.dtype == jnp.float32
    assert bool(jnp.all(jnp.isfinite(out)))
    print("KERNEL_OK")
</pallas_src>

<mosaic_0001>
module attributes {stable_mosaic.version = 11 : i64} {
  func.func @gat_project_kernel(%arg0: i32, %arg1: memref<16x8xf32, #tpu.memory_space<vmem>>, %arg2: memref<8x128xf32, #tpu.memory_space<vmem>>, %arg3: memref<1x128xf32, #tpu.memory_space<vmem>>, %arg4: memref<1x128xf32, #tpu.memory_space<vmem>>, %arg5: memref<16x128xf32, #tpu.memory_space<vmem>>, %arg6: memref<1x16xf32, #tpu.memory_space<vmem>>, %arg7: memref<16x1xf32, #tpu.memory_space<vmem>>) attributes {dimension_semantics = [#tpu.dimension_semantics<arbitrary>], iteration_bounds = array<i64: 1>, scalar_prefetch = 0 : i64, scratch_operands = 0 : i64, tpu.core_type = #tpu.core_type<tc>, window_params = [{pipeline_mode = #tpu.pipeline_mode<synchronous>, transform_indices = @transform_0, window_bounds = array<i64: 16, 8>}, {pipeline_mode = #tpu.pipeline_mode<synchronous>, transform_indices = @transform_1, window_bounds = array<i64: 8, 128>}, {pipeline_mode = #tpu.pipeline_mode<synchronous>, transform_indices = @transform_2, window_bounds = array<i64: 1, 128>}, {pipeline_mode = #tpu.pipeline_mode<synchronous>, transform_indices = @transform_3, window_bounds = array<i64: 1, 128>}, {pipeline_mode = #tpu.pipeline_mode<synchronous>, transform_indices = @transform_4, window_bounds = array<i64: 16, 128>}, {pipeline_mode = #tpu.pipeline_mode<synchronous>, transform_indices = @transform_5, window_bounds = array<i64: 1, 16>}, {pipeline_mode = #tpu.pipeline_mode<synchronous>, transform_indices = @transform_6, window_bounds = array<i64: 16, 1>}]} {
    %c0 = arith.constant 0 : index
    %c0_0 = arith.constant 0 : index
    %0 = vector.load %arg1[%c0, %c0_0] : memref<16x8xf32, #tpu.memory_space<vmem>>, vector<16x8xf32>
    %1 = arith.truncf %0 : vector<16x8xf32> to vector<16x8xbf16>
    %c0_1 = arith.constant 0 : index
    %c0_2 = arith.constant 0 : index
    %2 = vector.load %arg2[%c0_1, %c0_2] : memref<8x128xf32, #tpu.memory_space<vmem>>, vector<8x128xf32>
    %3 = arith.truncf %2 : vector<8x128xf32> to vector<8x128xbf16>
    %cst = arith.constant dense<0.000000e+00> : vector<16x128xf32>
    %4 = tpu.matmul %1, %3, %cst {dimension_numbers = #tpu.dot_dimension_numbers<[1], [0], [0], [1], [0, 0, 1, 1], [], []>} : vector<16x8xbf16>, vector<8x128xbf16>, vector<16x128xf32> -> vector<16x128xf32>
    %c0_3 = arith.constant 0 : index
    %c0_4 = arith.constant 0 : index
    %5 = vector.load %arg5[%c0_3, %c0_4] : memref<16x128xf32, #tpu.memory_space<vmem>>, vector<16x128xf32>
    tpu.vector_store %arg5[%c0_3, %c0_4], %4 {strides = array<i32>} : memref<16x128xf32, #tpu.memory_space<vmem>>, vector<16x128xf32>,
    %c0_5 = arith.constant 0 : index
    %c0_6 = arith.constant 0 : index
    %6 = vector.load %arg4[%c0_5, %c0_6] : memref<1x128xf32, #tpu.memory_space<vmem>>, vector<1x128xf32>
    %7 = vector.broadcast %6 : vector<1x128xf32> to vector<16x128xf32>
    %8 = arith.mulf %4, %7 : vector<16x128xf32>
    %cst_7 = arith.constant dense<0.000000e+00> : vector<16xf32>
    %9 = vector.multi_reduction <add>, %8, %cst_7 [1] : vector<16x128xf32> to vector<16xf32>
    %10 = vector.shape_cast %9 : vector<16xf32> to vector<16x1xf32>
    %c0_8 = arith.constant 0 : index
    %c0_9 = arith.constant 0 : index
    %11 = vector.load %arg7[%c0_8, %c0_9] : memref<16x1xf32, #tpu.memory_space<vmem>>, vector<16x1xf32>
    tpu.vector_store %arg7[%c0_8, %c0_9], %10 {strides = array<i32>} : memref<16x1xf32, #tpu.memory_space<vmem>>, vector<16x1xf32>,
    %c0_10 = arith.constant 0 : index
    %c0_11 = arith.constant 0 : index
    %12 = vector.load %arg3[%c0_10, %c0_11] : memref<1x128xf32, #tpu.memory_space<vmem>>, vector<1x128xf32>
    %13 = vector.broadcast %12 : vector<1x128xf32> to vector<16x128xf32>
    %14 = arith.mulf %4, %13 : vector<16x128xf32>
    %cst_12 = arith.constant 1.000000e+00 : f32
    %15 = vector.broadcast %cst_12 : f32 to vector<1x128xf32>
    %cst_13 = arith.constant dense<0.000000e+00> : vector<1x16xf32>
    %16 = tpu.matmul %15, %14, %cst_13 {dimension_numbers = #tpu.dot_dimension_numbers<[1], [1], [0], [0], [0, 0, 1, 0], [], []>} : vector<1x128xf32>, vector<16x128xf32>, vector<1x16xf32> -> vector<1x16xf32>
    %c0_14 = arith.constant 0 : index
    %c0_15 = arith.constant 0 : index
    %17 = vector.load %arg6[%c0_14, %c0_15] : memref<1x16xf32, #tpu.memory_space<vmem>>, vector<1x16xf32>
    tpu.vector_store %arg6[%c0_14, %c0_15], %16 {strides = array<i32>} : memref<1x16xf32, #tpu.memory_space<vmem>>, vector<1x16xf32>,
    return
  }
  func.func @transform_0(%arg0: i32) -> (i32, i32) {
    %c0_i32 = arith.constant 0 : i32
    %c0_i32_0 = arith.constant 0 : i32
    %c0_i32_1 = arith.constant 0 : i32
    return %c0_i32, %c0_i32_0 : i32, i32
  }
  func.func @transform_1(%arg0: i32) -> (i32, i32) {
    %c0_i32 = arith.constant 0 : i32
    %c0_i32_0 = arith.constant 0 : i32
    %c0_i32_1 = arith.constant 0 : i32
    return %c0_i32, %c0_i32_0 : i32, i32
  }
  func.func @transform_2(%arg0: i32) -> (i32, i32) {
    %c0_i32 = arith.constant 0 : i32
    %c0_i32_0 = arith.constant 0 : i32
    %c0_i32_1 = arith.constant 0 : i32
    return %c0_i32, %c0_i32_0 : i32, i32
  }
  func.func @transform_3(%arg0: i32) -> (i32, i32) {
    %c0_i32 = arith.constant 0 : i32
    %c0_i32_0 = arith.constant 0 : i32
    %c0_i32_1 = arith.constant 0 : i32
    return %c0_i32, %c0_i32_0 : i32, i32
  }
  func.func @transform_4(%arg0: i32) -> (i32, i32) {
    %c0_i32 = arith.constant 0 : i32
    %c0_i32_0 = arith.constant 0 : i32
    %c0_i32_1 = arith.constant 0 : i32
    return %c0_i32, %c0_i32_0 : i32, i32
  }
  func.func @transform_5(%arg0: i32) -> (i32, i32) {
    %c0_i32 = arith.constant 0 : i32
    %c0_i32_0 = arith.constant 0 : i32
    %c0_i32_1 = arith.constant 0 : i32
    return %c0_i32, %c0_i32_0 : i32, i32
  }
  func.func @transform_6(%arg0: i32) -> (i32, i32) {
    %c0_i32 = arith.constant 0 : i32
    %c0_i32_0 = arith.constant 0 : i32
    %c0_i32_1 = arith.constant 0 : i32
    return %c0_i32, %c0_i32_0 : i32, i32
  }
}

</mosaic_0001>

<bundles_post_ra>
// kernel: tpu_custom_call.1
= control target key start
LH: loop header
LB: loop body
LE: loop exit
PB: predicated region body
PF: predicated region fallthrough
CT: control target
= control target key end

     0   :  { %12 = vsyncpa [#allocation3], 0  ;;  %vm32_vm0 = vcmask 1043456   ;;  %s258_s0 = inlined_call_operand.vmem [shape: f32[16,8], index: 0, kind: input, shape index: {}]   ;;  %s259_s1 = inlined_call_operand.vmem [shape: f32[8,128], index: 1, kind: input, shape index: {}]   ;;  %s260_s2 = inlined_call_operand.vmem [shape: f32[1,128], index: 2, kind: input, shape index: {}]   ;;  %s261_s3 = inlined_call_operand.vmem [shape: f32[1,128], index: 3, kind: input, shape index: {}]   ;;  %s262_s4 = inlined_call_operand.hbm [shape: f32[16,128], index: 4, kind: output, shape index: {0}]   ;;  %s263_s5 = inlined_call_operand.hbm [shape: f32[1,16], index: 5, kind: output, shape index: {1}]   ;;  %s264_s6 = inlined_call_operand.vmem [shape: f32[16,1], index: 6, kind: output, shape index: {2}]  }
   0x1   :  { %v26_v0 = vld [vmem:[%s259_s1] sm:$0xff]  ;;  %v24_v2 = vld [vmem:[%s258_s0 + $0x8] sm:$0xff] }
   0x2   :  { %v23_v1 = vld [vmem:[%s258_s0] sm:$0xff]  ;;  %v27_v3 = vpack.c.bf16 %v26_v0, %v26_v0 }
   0x3   :  { %13 = vsyncpa [#allocation5], 0  ;;  %v25_v5 = vpack.c.bf16 %v24_v2, %v23_v1  ;;  %vm28_vm1 = vcmask 64512   ;;  %v137_v6 = vld [vmem:[%s261_s3] ss:$0 sm:$0xff]  ;;  %s191_s0 = smov [#allocation2]  }
   0x4   :  { %v34_v4 = vsel %vm32_vm0, %v27_v3, 0  ;;  %v138_v9 = vld [vmem:[%s260_s2] ss:$0 sm:$0xff]  ;;  %s97_s30 = sshll.u32 %s191_s0, 4  ;;  %s99_s8 = sshll.u32 %s262_s4, 4  ;;  %v192_v14 = vmov 1.0   ;;  %s98_s30 = int_to_ptr.vmem [resolvable:$true] %s97_s30  ;;  %s100_s8 = int_to_ptr.hbm [resolvable:$true] %s99_s8 }
   0x5   :  { %43 = vmatpush.bf16.msra.mxu0 %v34_v4  ;;  %s193_s9 = smov 128   ;;  %s194_s2 = smov 8   ;;  %vm62_vm2 = vcmask 7168   ;;  %vm91_vm3 = vcmask 122880  }
   0x6   :  { %s195_s14 = smov [#allocation4]   ;;  %s113_s17 = sshll.u32 %s263_s5, 4  ;;  %s114_s17 = int_to_ptr.hbm [resolvable:$true] %s113_s17 }
   0x7   :  { %s111_s4 = sshll.u32 %s195_s14, 4  ;;  %s112_s4 = int_to_ptr.vmem [resolvable:$true] %s111_s4 }
   0x8   :  { %131 = vmatmul.msk.bf16.vlgmr.msra.gmra.mxu0 %vm28_vm1, %v25_v5 }
  0x85   :  { %v45_v7 = vpop.f32.mrf.mxu0 }
  0x86   :  { %50 = vst [vmem:[#allocation2] sm:$0xff] %v45_v7  ;;  %v56_v8 = vmul.f32 %v137_v6, %v45_v7  ;;  %v69_v13 = vmul.f32 %v138_v9, %v45_v7 }
  0x88   :  { %58 = vadd.xlane.f32.xlu0 %v56_v8 }
  0x8d   :  { %v47_v10 = vpop.f32.mrf.mxu0 }
  0x8e   :  { %51 = vst [vmem:[#allocation2 + $0x8] sm:$0xff] %v47_v10  ;;  %v70_v11 = vmul.f32 %v138_v9, %v47_v10  ;;  %v57_v12 = vmul.f32 %v137_v6, %v47_v10 }
  0x8f   :  { %105 = dma.vmem_to_hbm [thread:$0]  %s98_s30, 256, %s100_s8, [#allocation3], %s193_s9, %s193_s9, %s194_s2  }
  0x90   :  { %85 = vmatpush.xpose.msra.mxu1 %v70_v11  ;;  %60 = vadd.xlane.f32.xlu0 %v57_v12 }
  0x94   :  { %86 = vmatpush.xpose.msra.mxu1 %v69_v13 }
  0x97   :  { %87 = vmatmul.f32.vlgmr.msra.gmra.mxu1 %v192_v14 }
  0xfb   :  { %v59_v15 = vpop.xlane.xlu0 %58 }
  0xfc   :  { %63 = vst.msk [vmem:[%s264_s6] sm:$0xff] %vm62_vm2, %v59_v15 }
 0x103   :  { %v61_v16 = vpop.xlane.xlu0 %60 }
 0x104   :  { %64 = vst.msk [vmem:[%s264_s6 + $0x8] sm:$0xff] %vm62_vm2, %v61_v16 }
 0x114   :  { %v88_v17 = vpop.f32.mrf.mxu1 }
 0x115   :  { %92 = vst.msk [vmem:[#allocation4] sm:$0x1] %vm91_vm3, %v88_v17 }
 0x116   :  { %116 = dma.vmem_to_hbm [thread:$0]  %s112_s4, 16, %s114_s17, [#allocation5]  }
 0x117   :  { %187 = dma.done.wait [#allocation3], 256  }
 0x118   :  { %188 = vsyncadd [#allocation3], 4294967040 }
 0x119   :  { %189 = dma.done.wait [#allocation5], 16  }
 0x11a   :  { %190 = vsyncadd [#allocation5], 4294967280 }
 0x11b   :  { %129 = vsyncpa [#allocation3], 1 }
 0x11c   :  { %130 = vsyncpa [#allocation5], 1 }

</bundles_post_ra>
